<compile_context>
chip_gen: v5e
topology: v5e:2x2
jax: 0.10.0
libtpu: 0.0.40
codegen_flags: <defaults>
</compile_context>

<pallas_src>
import jax
import jax.numpy as jnp
from jax.experimental import pallas as pl
from jax.experimental.pallas import tpu as pltpu


def _relu_conv1x1_kernel(w_ref, x_ref, o_ref):
    # w_ref: (C_out, C_in) weight, VMEM-resident across the whole grid
    # x_ref: (1, C_in, tn)  activation tile
    # o_ref: (1, C_out, tn) lane-dense output tile (unmasked stores)
    x = jnp.maximum(x_ref[0], 0.0)                                  # fused ReLU (VPU)
    o_ref[0] = jnp.dot(w_ref[...], x,
                       preferred_element_type=jnp.float32).astype(o_ref.dtype)


def relu_conv1x1(x_nchw, weight_oihw, *, tn=512):
    """ReLU followed by 1x1 conv (no bias). NCHW in / NCHW out, no transposes."""
    N, C_in, H, W = x_nchw.shape
    C_out = weight_oihw.shape[0]
    HW = H * W

    x_flat = x_nchw.reshape(N, C_in, HW)            # contiguous reshape, free
    w_mat = weight_oihw.reshape(C_out, C_in)        # (C_out, C_in), free

    tn = min(tn, HW)                                # full dim if spatial is tiny
    grid = (N, pl.cdiv(HW, tn))

    itemsize = jnp.dtype(x_nchw.dtype).itemsize
    cost = pl.CostEstimate(
        flops=2 * N * HW * C_in * C_out,
        transcendentals=0,
        bytes_accessed=(x_flat.size + w_mat.size + N * C_out * HW) * itemsize,
    )

    out_flat = pl.pallas_call(
        _relu_conv1x1_kernel,
        out_shape=jax.ShapeDtypeStruct((N, C_out, HW), x_nchw.dtype),
        grid=grid,
        in_specs=[
            # weight: one small block, same index every step -> stays in VMEM
            pl.BlockSpec((C_out, C_in), lambda n, j: (0, 0)),
            # activation: tile the spatial axis (lane axis) for pipelining
            pl.BlockSpec((1, C_in, tn), lambda n, j: (n, 0, j)),
        ],
        out_specs=pl.BlockSpec((1, C_out, tn), lambda n, j: (n, 0, j)),
        compiler_params=pltpu.CompilerParams(
            dimension_semantics=("parallel", "parallel")),
        cost_estimate=cost,
    )(w_mat, x_flat)

    return out_flat.reshape(N, C_out, H, W)


if __name__ == "__main__":
    key = jax.random.PRNGKey(0)
    kx, kw = jax.random.split(key)

    # Shapes implied by the module: ReLU + Conv2d(96 -> 32, 1x1, bias=False)
    x = jax.random.normal(kx, (1, 96, 56, 56), dtype=jnp.float32)
    weight = jax.random.normal(kw, (32, 96, 1, 1), dtype=jnp.float32) * 0.05

    out = relu_conv1x1(x, weight)
    out = jax.block_until_ready(out)

    # Reference check in plain JAX.
    ref = jax.lax.conv_general_dilated(
        jnp.maximum(x, 0.0), weight,
        window_strides=(1, 1), padding="VALID",
        dimension_numbers=("NCHW", "OIHW", "NCHW"))
    assert out.shape == (1, 32, 56, 56)
    assert jnp.allclose(out, ref, atol=1e-4, rtol=1e-4)

    print("KERNEL_OK")
</pallas_src>

<mosaic_0001>
module attributes {stable_mosaic.version = 11 : i64} {
  func.func @_relu_conv1x1_kernel(%arg0: i32, %arg1: i32, %arg2: memref<32x96xf32, #tpu.memory_space<vmem>>, %arg3: memref<1x96x512xf32, #tpu.memory_space<vmem>>, %arg4: memref<1x32x512xf32, #tpu.memory_space<vmem>>) attributes {dimension_semantics = [#tpu.dimension_semantics<parallel>, #tpu.dimension_semantics<parallel>], iteration_bounds = array<i64: 1, 7>, scalar_prefetch = 0 : i64, scratch_operands = 0 : i64, tpu.core_type = #tpu.core_type<tc>, window_params = [{pipeline_mode = #tpu.pipeline_mode<synchronous>, transform_indices = @transform_0, window_bounds = array<i64: 32, 96>}, {transform_indices = @transform_1, window_bounds = array<i64: 1, 96, 512>}, {transform_indices = @transform_2, window_bounds = array<i64: 1, 32, 512>}]} {
    %c0 = arith.constant 0 : index
    %c0_0 = arith.constant 0 : index
    %c0_1 = arith.constant 0 : index
    %0 = vector.load %arg3[%c0, %c0_0, %c0_1] : memref<1x96x512xf32, #tpu.memory_space<vmem>>, vector<1x96x512xf32>
    %1 = vector.shape_cast %0 : vector<1x96x512xf32> to vector<96x512xf32>
    %cst = arith.constant 0.000000e+00 : f32
    %2 = vector.broadcast %cst : f32 to vector<96x512xf32>
    %3 = arith.maximumf %1, %2 : vector<96x512xf32>
    %c0_2 = arith.constant 0 : index
    %c0_3 = arith.constant 0 : index
    %4 = vector.load %arg2[%c0_2, %c0_3] : memref<32x96xf32, #tpu.memory_space<vmem>>, vector<32x96xf32>
    %cst_4 = arith.constant dense<0.000000e+00> : vector<32x512xf32>
    %5 = tpu.matmul %4, %3, %cst_4 {dimension_numbers = #tpu.dot_dimension_numbers<[1], [0], [0], [1], [0, 0, 1, 1], [], []>} : vector<32x96xf32>, vector<96x512xf32>, vector<32x512xf32> -> vector<32x512xf32>
    %c0_5 = arith.constant 0 : index
    %c0_6 = arith.constant 0 : index
    %c0_7 = arith.constant 0 : index
    %6 = vector.load %arg4[%c0_5, %c0_6, %c0_7] : memref<1x32x512xf32, #tpu.memory_space<vmem>>, vector<1x32x512xf32>
    %7 = vector.shape_cast %6 : vector<1x32x512xf32> to vector<32x512xf32>
    %8 = vector.shape_cast %5 : vector<32x512xf32> to vector<1x32x512xf32>
    tpu.vector_store %arg4[%c0_5, %c0_6, %c0_7], %8 {strides = array<i32>} : memref<1x32x512xf32, #tpu.memory_space<vmem>>, vector<1x32x512xf32>,
    return
  }
  func.func @transform_0(%arg0: i32, %arg1: i32) -> (i32, i32) {
    %c0_i32 = arith.constant 0 : i32
    %c0_i32_0 = arith.constant 0 : i32
    %c0_i32_1 = arith.constant 0 : i32
    return %c0_i32, %c0_i32_0 : i32, i32
  }
  func.func @transform_1(%arg0: i32, %arg1: i32) -> (i32, i32, i32) {
    %c0_i32 = arith.constant 0 : i32
    %c0_i32_0 = arith.constant 0 : i32
    return %arg0, %c0_i32, %arg1 : i32, i32, i32
  }
  func.func @transform_2(%arg0: i32, %arg1: i32) -> (i32, i32, i32) {
    %c0_i32 = arith.constant 0 : i32
    %c0_i32_0 = arith.constant 0 : i32
    return %arg0, %c0_i32, %arg1 : i32, i32, i32
  }
}

</mosaic_0001>

<bundles_post_ra>
// kernel: tpu_custom_call.1
= control target key start
LH: loop header
LB: loop body
LE: loop exit
PB: predicated region body
PF: predicated region fallthrough
CT: control target
= control target key end

     0   :  { %s1176_s0 = inlined_call_operand.hbm [shape: f32[32,96], index: 0, kind: input, shape index: {}]   ;;  %s1177_s1 = inlined_call_operand.hbm [shape: f32[1,96,3136], index: 1, kind: input, shape index: {}]   ;;  %s1178_s2 = inlined_call_operand.hbm [shape: f32[1,32,3136], index: 2, kind: output, shape index: {}]  }
   0x1   :  { %1180 = sst [smem:[#allocation12_spill]] %s1176_s0 }
   0x2   :  { %7 = vsyncpa [#allocation3], 0 }
   0x3   :  { %8 = vsyncpa [#allocation6], 0 }
   0x4   :  { %10 = vsyncpa [#allocation6 + $0x1], 0 }
   0x5   :  { %11 = vsyncpa [#allocation4], 0 }
   0x6   :  { %13 = vsyncpa [#allocation4 + $0x1], 0  ;;  %s897_s9 = smov 0   ;;  %s899_s10 = smov 0  }
   0x7   :  { %s901_s11 = smov 0   ;;  %s903_s12 = smov 0  }
   0x8   :  { %s905_s13 = smov 0   ;;  %s907_s14 = smov 0  }
   0x9 LB: > { %s587_s15 = sadd.s32 4294967295, %s871_s14   ;;  %s588_s16 = sadd.s32 4294967294, %s871_s14   ;;  %s871_s14 = sphi %s907_s14, %s19_s14   ;;  %s867_s13 = sphi %s905_s13, %s1196_s13   ;;  %s863_s12 = sphi %s903_s12, %s1195_s12   ;;  %s859_s11 = sphi %s901_s11, %s1194_s11   ;;  %s855_s10 = sphi %s899_s10, %s1193_s10   ;;  %s851_s9 = sphi %s897_s9, %s1192_s9  }
   0xa   : > { %s28_s17 = sadd.s32 1, %s867_s13  ;;  %s61_s18 = sadd.s32 1, %s859_s11 }
   0xb   : > { %p29_p0 = scmp.ge.s32.totalorder %s28_s17, 7  ;;  %p68_p1 = scmp.ne.s32.totalorder %s859_s11, %s855_s10 }
   0xc   : > { %p69_p2 = scmp.eq.s32.totalorder %s871_s14, 0  ;;  %p74_p3 = scmp.ne.s32.totalorder %s855_s10, %s851_s9 }
   0xd   : > { %s1198_s17 = smov (%p29_p0, %s28_s17), 0  ;;  %p942_p5 = scmp.eq.s32.totalorder %s587_s15, 0 }
   0xe   : > { %1181 = sst [smem:[#allocation11_spill]] %s1198_s17  ;;  %p938_p4 = por %p69_p2, %p68_p1 }
   0xf   : > { %s57_s21 = ssub.s32 %s867_s13, %s1198_s17  ;;  %p100_p6 = scmp.eq.s32.totalorder %s587_s15, 6 }
  0x10   : > { %p59_p7 = scmp.eq.s32.totalorder %s57_s21, 0  ;;  %p950_p8 = por %p942_p5, %p74_p3 }
  0x11   : > { %p954_p9 = por %p100_p6, %p68_p1  ;;  %p106_p10 = scmp.eq.s32.totalorder %s588_s16, 6 }
  0x12   : > { %s959_s24 = scalar_select %p59_p7, %s859_s11, %s61_s18  }
  0x13   : > { %p961_p11 = por %p106_p10, %p74_p3  ;;  %p589_p12 = scmp.ge.s32.totalorder %s871_s14, 1 }
  0x14   : > { %p113_p13 = scmp.lt.s32.totalorder %s871_s14, 8  ;;  %s1187_s0 = sld [smem:[#allocation12_spill]] }
  0x15   : > { %s873_s30 = smov [#allocation2]   ;;  %s874_s4 = smov 128  }
  0x16   : > { %p970_p0 = pnand %p589_p12, %p113_p13  ;;  %s126_s3 = sshll.u32 %s873_s30, 4  ;;  %s127_s3 = int_to_ptr.vmem [resolvable:$true] %s126_s3 }
  0x17   : > { %s875_s5 = smov 8   ;;  %p591_p3 = scmp.ge.s32.totalorder %s871_s14, 7 }
  0x18   : > { %p639_p1 = pneg %p970_p0 }
  0x19   : > { %136 = sbr.rel (%p591_p3) target bundleno = 62 (0x3e), region = 20 }
  0x1a   : > { %s124_s28 = sshll.u32 %s1187_s0, 4  ;;  %p640_p2 = pnand %p639_p1, %p942_p5  ;;  %s125_s28 = int_to_ptr.hbm [resolvable:$true] %s124_s28 }
  0x1c   : > { %642 = dma.hbm_to_vmem [thread:$0]  (!%p640_p2), %s125_s28, 512, %s127_s3, [#allocation3], %s874_s4, %s874_s4, %s875_s5  }
  0x1e   : > { %139 = sbr.rel (!%p938_p4) target bundleno = 62 (0x3e), region = 24  ;;  %s140_s6 = sand.u32 (%p938_p4), 1, %s859_s11  }
  0x1f   : > { %s592_s7 = sshll.u32 (%p938_p4), %s867_s13, 2  ;;  %s631_s8 = smul.u32 (%p938_p4), 384, %s140_s6 }
  0x20   : > { %s146_s15 = ssub.s32 (%p938_p4), 25, %s592_s7  ;;  %s986_s26 = scalar_lea.sflag (%p938_p4), [#allocation6], %s140_s6 }
  0x21   : > { %p147_p6 = scmp.lt.s32.totalorder (%p938_p4), %s146_s15, 4  ;;  %s144_s27 = scalar_lea.vmem (%p938_p4), [#allocation5], %s631_s8 }
  0x23   : > { %s1200_s15 = smov (!%p147_p6, %s146_s15), 4 }
  0x24   : > { %s149_s16 = smul.u32 96, %s1200_s15 }
  0x26   : > { %s150_s18 = ssub.s32 384, %s149_s16 }
  0x27   : > { %s151_s21 = sshll.u32 %s150_s18, 4 }
  0x28   : > { %152 = vsyncadd %s986_s26, %s151_s21  ;;  %p989_p4 = scmp.ne.s32.totalorder %s149_s16, 0  ;;  %s627_s28 = sshll.u32 %s867_s13, 5 }
  0x29   : > { %s157_s4 = scalar_lea.hbm %s1177_s1, %s627_s28  ;;  %s595_s5 = sshll.u32 %s1200_s15, 3 }
  0x2a   : > { %s160_s7 = sshll.u32 %s157_s4, 4  ;;  %s162_s6 = sshll.u32 %s144_s27, 4  ;;  %s161_s7 = int_to_ptr.hbm [resolvable:$true] %s160_s7  ;;  %s163_s6 = int_to_ptr.vmem [resolvable:$true] %s162_s6 }
  0x2b   : > { %s597_s8 = smul.u32 1536, %s1200_s15  ;;  %s754_s16 = sshra.s32 %s163_s6, 4  ;;  %s755_s16 = int_to_ptr.vmem [resolvable:$true] %s754_s16 }
  0x2c   : > { %s876_s28 = smov [#allocation5]  }
  0x2d   : > { %s737_s18 = sshrl.u32 %s597_s8, 4  ;;  %s765_s30 = scalar_lea.vmem %s876_s28, 768 }
  0x2e   : > { %s773_s21 = sshll.u32 %s737_s18, 4  ;;  %s740_s0 = sadd.s32 1, %s737_s18 }
  0x2f   : > { %p739_p7 = scmp.ne.s32.totalorder %s773_s21, %s597_s8 }
  0x31   : > { %s1202_s0 = smov (!%p739_p7, %s740_s0), %s737_s18 }
  0x32   : > { %s761_s17 = scalar_lea.vmem %s755_s16, %s1202_s0 }
  0x33   : > { %p762_p10 = scmp.ne.s32.totalorder %s755_s16, %s761_s17  ;;  %p767_p1 = scmp.lt.s32.totalorder %s765_s30, %s761_s17 }
  0x35   : > { %p763_p12 = pnand %p762_p10, %p989_p4 }
  0x37   : > { %p764_p13 = pneg %p763_p12 }
  0x39   : > { %p769_p2 = pnand %p767_p1, %p764_p13 }
  0x3b   : > { %772 = shalt.err (!%p769_p2)
}
  0x3c   : > { %s877_s27 = smov 3200   ;;  %s878_s3 = smov 512  }
  0x3d   : > { %168 = dma.hbm_to_vmem [thread:$0]  (%p989_p4), %s161_s7, %s597_s8, %s163_s6, %s986_s26, %s877_s27, %s878_s3, %s595_s5  }
  0x3e PF: > { %174 = sbr.rel (%p970_p0) target bundleno = 289 (0x121), region = 28 }
  0x43   : > { %838 = dma.done.wait (%p942_p5), [#allocation3], 512  }
  0x44   : > { %840 = vsyncadd (%p942_p5), [#allocation3], 4294966784  ;;  %s1013_s0 = sand.u32 1, %s855_s10  }
  0x45   : > { %s632_s17 = smul.u32 384, %s1013_s0  ;;  %s182_s15 = scalar_lea.sflag [#allocation6], %s1013_s0 }
  0x47   : > { %s1017_s26 = scalar_lea.vmem [#allocation5], %s632_s17 }
  0x48   : > { %842 = dma.done.wait (%p950_p8), %s182_s15, 6144  }
  0x49   : > { %844 = vsyncadd (%p950_p8), %s182_s15, 4294961152  ;;  %v263_v0 = vld [vmem:[%s1017_s26 + $0x170] sm:$0xff]  ;;  %v264_v1 = vld [vmem:[%s1017_s26 + $0x178] sm:$0xff]  ;;  %vm317_vm0 = vcmask 785408   ;;  %s600_s20 = sshll.u32 %s1013_s0, 7  ;;  %s463_s29 = scalar_lea.sflag [#allocation4], %s1013_s0 }
  0x4a   : > { %v259_v2 = vld [vmem:[%s1017_s26 + $0x150] sm:$0xff]  ;;  %v311_v3 = vmax.f32 %v263_v0, 0.0  ;;  %v312_v4 = vmax.f32 %v264_v1, 0.0  ;;  %v260_v6 = vld [vmem:[%s1017_s26 + $0x158] sm:$0xff]  ;;  %v261_v11 = vld [vmem:[%s1017_s26 + $0x160] sm:$0xff]  ;;  %s1088_s22 = scalar_lea.vmem [#allocation7], %s600_s20 }
  0x4b   : > { %v307_v5 = vmax.f32 %v259_v2, 0.0  ;;  %v255_v7 = vld [vmem:[%s1017_s26 + $0x130] sm:$0xff]  ;;  %v256_v8 = vld [vmem:[%s1017_s26 + $0x138] sm:$0xff]  ;;  %v308_v9 = vmax.f32 %v260_v6, 0.0  ;;  %v262_v12 = vld [vmem:[%s1017_s26 + $0x168] sm:$0xff]  ;;  %v309_v15 = vmax.f32 %v261_v11, 0.0 }
  0x4c   : > { %v303_v10 = vmax.f32 %v255_v7, 0.0  ;;  %v251_v13 = vld [vmem:[%s1017_s26 + $0x110] sm:$0xff]  ;;  %392 = vmatpush.msra.mxu2 %v311_v3  ;;  %421 = vmatpush.msra.mxu3 %v312_v4  ;;  %v304_v14 = vmax.f32 %v256_v8, 0.0  ;;  %v310_v16 = vmax.f32 %v262_v12, 0.0  ;;  %v252_v17 = vld [vmem:[%s1017_s26 + $0x118] sm:$0xff]  ;;  %v257_v18 = vld [vmem:[%s1017_s26 + $0x140] sm:$0xff] }
  0x4d   : > { %v258_v19 = vld [vmem:[%s1017_s26 + $0x148] sm:$0xff]  ;;  %v305_v20 = vmax.f32 %v257_v18, 0.0  ;;  %v247_v22 = vld [vmem:[%s1017_s26 + $0xf0] sm:$0xff]  ;;  %v248_v23 = vld [vmem:[%s1017_s26 + $0xf8] sm:$0xff]  ;;  %v299_v25 = vmax.f32 %v251_v13, 0.0  ;;  %v300_v26 = vmax.f32 %v252_v17, 0.0  ;;  %334 = vmatpush.msra.mxu0 %v309_v15 }
  0x4e   : > { %v306_v21 = vmax.f32 %v258_v19, 0.0  ;;  %v253_v24 = vld [vmem:[%s1017_s26 + $0x120] sm:$0xff]  ;;  %393 = vmatpush.msra.mxu2 %v307_v5  ;;  %422 = vmatpush.msra.mxu3 %v308_v9  ;;  %v254_v27 = vld [vmem:[%s1017_s26 + $0x128] sm:$0xff]  ;;  %v243_v28 = vld [vmem:[%s1017_s26 + $0xd0] sm:$0xff]  ;;  %v295_v34 = vmax.f32 %v247_v22, 0.0  ;;  %v296_v35 = vmax.f32 %v248_v23, 0.0 }
  0x4f   : > { %363 = vmatpush.msra.mxu1 %v310_v16  ;;  %v301_v29 = vmax.f32 %v253_v24, 0.0  ;;  %v302_v30 = vmax.f32 %v254_v27, 0.0  ;;  %v244_v31 = vld [vmem:[%s1017_s26 + $0xd8] sm:$0xff]  ;;  %v249_v32 = vld [vmem:[%s1017_s26 + $0x100] sm:$0xff]  ;;  %v250_v33 = vld [vmem:[%s1017_s26 + $0x108] sm:$0xff]  ;;  %335 = vmatpush.msra.mxu0 %v305_v20  ;;  %v291_v42 = vmax.f32 %v243_v28, 0.0 }
  0x50   : > { %394 = vmatpush.msra.mxu2 %v303_v10  ;;  %423 = vmatpush.msra.mxu3 %v304_v14  ;;  %v245_v36 = vld [vmem:[%s1017_s26 + $0xe0] sm:$0xff]  ;;  %v246_v37 = vld [vmem:[%s1017_s26 + $0xe8] sm:$0xff]  ;;  %v297_v38 = vmax.f32 %v249_v32, 0.0  ;;  %v298_v39 = vmax.f32 %v250_v33, 0.0  ;;  %v239_v40 = vld [vmem:[%s1017_s26 + $0xb0] sm:$0xff]  ;;  %v292_v43 = vmax.f32 %v244_v31, 0.0 }
  0x51   : > { %364 = vmatpush.msra.mxu1 %v306_v21  ;;  %v240_v41 = vld [vmem:[%s1017_s26 + $0xb8] sm:$0xff]  ;;  %v241_v44 = vld [vmem:[%s1017_s26 + $0xc0] sm:$0xff]  ;;  %v242_v45 = vld [vmem:[%s1017_s26 + $0xc8] sm:$0xff]  ;;  %336 = vmatpush.msra.mxu0 %v301_v29  ;;  %v293_v46 = vmax.f32 %v245_v36, 0.0  ;;  %v294_v47 = vmax.f32 %v246_v37, 0.0  ;;  %v287_v50 = vmax.f32 %v239_v40, 0.0 }
  0x52   : > { %395 = vmatpush.msra.mxu2 %v299_v25  ;;  %424 = vmatpush.msra.mxu3 %v300_v26  ;;  %v235_v48 = vld [vmem:[%s1017_s26 + $0x90] sm:$0xff]  ;;  %v236_v49 = vld [vmem:[%s1017_s26 + $0x98] sm:$0xff]  ;;  %v288_v51 = vmax.f32 %v240_v41, 0.0  ;;  %v237_v52 = vld [vmem:[%s1017_s26 + $0xa0] sm:$0xff]  ;;  %v289_v54 = vmax.f32 %v241_v44, 0.0  ;;  %v290_v55 = vmax.f32 %v242_v45, 0.0 }
  0x53   : > { %365 = vmatpush.msra.mxu1 %v302_v30  ;;  %v238_v53 = vld [vmem:[%s1017_s26 + $0xa8] sm:$0xff]  ;;  %337 = vmatpush.msra.mxu0 %v297_v38  ;;  %v231_v56 = vld [vmem:[%s1017_s26 + $0x70] sm:$0xff]  ;;  %v232_v57 = vld [vmem:[%s1017_s26 + $0x78] sm:$0xff]  ;;  %v283_v58 = vmax.f32 %v235_v48, 0.0  ;;  %v284_v59 = vmax.f32 %v236_v49, 0.0  ;;  %v285_v62 = vmax.f32 %v237_v52, 0.0 }
  0x54   : > { %396 = vmatpush.msra.mxu2 %v295_v34  ;;  %425 = vmatpush.msra.mxu3 %v296_v35  ;;  %v233_v60 = vld [vmem:[%s1017_s26 + $0x80] sm:$0xff]  ;;  %v234_v61 = vld [vmem:[%s1017_s26 + $0x88] sm:$0xff]  ;;  %v286_v63 = vmax.f32 %v238_v53, 0.0  ;;  %v227_v0 = vld [vmem:[%s1017_s26 + $0x50] sm:$0xff]  ;;  %v279_v2 = vmax.f32 %v231_v56, 0.0  ;;  %v280_v3 = vmax.f32 %v232_v57, 0.0 }
  0x55   : > { %366 = vmatpush.msra.mxu1 %v298_v39  ;;  %338 = vmatpush.msra.mxu0 %v293_v46  ;;  %v228_v1 = vld [vmem:[%s1017_s26 + $0x58] sm:$0xff]  ;;  %v229_v4 = vld [vmem:[%s1017_s26 + $0x60] sm:$0xff]  ;;  %v230_v5 = vld [vmem:[%s1017_s26 + $0x68] sm:$0xff]  ;;  %v281_v6 = vmax.f32 %v233_v60, 0.0  ;;  %v282_v7 = vmax.f32 %v234_v61, 0.0  ;;  %v275_v10 = vmax.f32 %v227_v0, 0.0 }
  0x56   : > { %397 = vmatpush.msra.mxu2 %v291_v42  ;;  %426 = vmatpush.msra.mxu3 %v292_v43  ;;  %v223_v8 = vld [vmem:[%s1017_s26 + $0x30] sm:$0xff]  ;;  %v224_v9 = vld [vmem:[%s1017_s26 + $0x38] sm:$0xff]  ;;  %v276_v11 = vmax.f32 %v228_v1, 0.0  ;;  %v225_v12 = vld [vmem:[%s1017_s26 + $0x40] sm:$0xff]  ;;  %v277_v14 = vmax.f32 %v229_v4, 0.0  ;;  %v278_v15 = vmax.f32 %v230_v5, 0.0 }
  0x57   : > { %367 = vmatpush.msra.mxu1 %v294_v47  ;;  %339 = vmatpush.msra.mxu0 %v289_v54  ;;  %v226_v13 = vld [vmem:[%s1017_s26 + $0x48] sm:$0xff]  ;;  %v219_v16 = vld [vmem:[%s1017_s26 + $0x10] sm:$0xff]  ;;  %v220_v17 = vld [vmem:[%s1017_s26 + $0x18] sm:$0xff]  ;;  %v271_v18 = vmax.f32 %v223_v8, 0.0  ;;  %v272_v19 = vmax.f32 %v224_v9, 0.0  ;;  %v273_v20 = vmax.f32 %v225_v12, 0.0 }
  0x58   : > { %398 = vmatpush.msra.mxu2 %v287_v50  ;;  %427 = vmatpush.msra.mxu3 %v288_v51  ;;  %v274_v21 = vmax.f32 %v226_v13, 0.0  ;;  %v221_v22 = vld [vmem:[%s1017_s26 + $0x20] sm:$0xff]  ;;  %v222_v23 = vld [vmem:[%s1017_s26 + $0x28] sm:$0xff]  ;;  %v267_v24 = vmax.f32 %v219_v16, 0.0  ;;  %v268_v25 = vmax.f32 %v220_v17, 0.0  ;;  %v315_v34 = vld [vmem:[#allocation2 + $0x10] sm:$0xff] }
  0x59   : > { %368 = vmatpush.msra.mxu1 %v290_v55  ;;  %340 = vmatpush.msra.mxu0 %v285_v62  ;;  %v217_v26 = vld [vmem:[%s1017_s26] sm:$0xff]  ;;  %v218_v27 = vld [vmem:[%s1017_s26 + $0x8] sm:$0xff]  ;;  %v269_v29 = vmax.f32 %v221_v22, 0.0  ;;  %v270_v30 = vmax.f32 %v222_v23, 0.0  ;;  %v316_v35 = vld [vmem:[#allocation2 + $0x18] sm:$0xff]  ;;  %s618_s19 = sshll.u32 (%p954_p9), %s863_s12, 2 }
  0x5a   : > { %399 = vmatpush.msra.mxu2 %v283_v58  ;;  %428 = vmatpush.msra.mxu3 %v284_v59  ;;  %v313_v28 = vld [vmem:[#allocation2] sm:$0xff]  ;;  %v265_v31 = vmax.f32 %v217_v26, 0.0  ;;  %v266_v32 = vmax.f32 %v218_v27, 0.0  ;;  %v314_v33 = vld [vmem:[#allocation2 + $0x8] sm:$0xff]  ;;  %s471_s4 = ssub.s32 (%p954_p9), 25, %s618_s19 }
  0x5b   : > { %369 = vmatpush.msra.mxu1 %v286_v63  ;;  %341 = vmatpush.msra.mxu0 %v281_v6  ;;  %p472_p5 = scmp.lt.s32.totalorder (%p954_p9), %s471_s4, 4 }
  0x5c   : > { %400 = vmatpush.msra.mxu2 %v279_v2  ;;  %429 = vmatpush.msra.mxu3 %v280_v3 }
  0x5d   : > { %370 = vmatpush.msra.mxu1 %v282_v7  ;;  %342 = vmatpush.msra.mxu0 %v277_v14 }
  0x5e   : > { %401 = vmatpush.msra.mxu2 %v275_v10  ;;  %430 = vmatpush.msra.mxu3 %v276_v11 }
  0x5f   : > { %371 = vmatpush.msra.mxu1 %v278_v15  ;;  %343 = vmatpush.msra.mxu0 %v273_v20 }
  0x60   : > { %402 = vmatpush.msra.mxu2 %v271_v18  ;;  %431 = vmatpush.msra.mxu3 %v272_v19 }
  0x61   : > { %372 = vmatpush.msra.mxu1 %v274_v21  ;;  %344 = vmatpush.msra.mxu0 %v269_v29 }
  0x62   : > { %403 = vmatpush.msra.mxu2 %v267_v24  ;;  %432 = vmatpush.msra.mxu3 %v268_v25 }
  0x63   : > { %609 = vmatmul.msk.f32.vlgmr.msra.gmra.mxu2 %vm317_vm0, %v313_v28  ;;  %613 = vmatmul.msk.f32.vlgmr.msra.gmra.mxu3 %vm317_vm0, %v313_v28 }
  0x64   : > { %373 = vmatpush.msra.mxu1 %v270_v30  ;;  %345 = vmatpush.msra.mxu0 %v265_v31 }
  0x65   : > { %601 = vmatmul.msk.f32.vlgmr.msra.gmra.mxu0 %vm317_vm0, %v313_v28 }
  0x66   : > { %374 = vmatpush.msra.mxu1 %v266_v32 }
  0x67   : > { %605 = vmatmul.msk.f32.vlgmr.msra.gmra.mxu1 %vm317_vm0, %v313_v28 }
  0x6b   : > { %610 = vmatmul.msk.f32.gmra.mxu2 %vm317_vm0, %v314_v33  ;;  %614 = vmatmul.msk.f32.gmra.mxu3 %vm317_vm0, %v314_v33 }
  0x6d   : > { %602 = vmatmul.msk.f32.gmra.mxu0 %vm317_vm0, %v314_v33 }
  0x6f   : > { %606 = vmatmul.msk.f32.gmra.mxu1 %vm317_vm0, %v314_v33 }
  0x73   : > { %611 = vmatmul.msk.f32.gmra.mxu2 %vm317_vm0, %v315_v34  ;;  %615 = vmatmul.msk.f32.gmra.mxu3 %vm317_vm0, %v315_v34 }
  0x75   : > { %603 = vmatmul.msk.f32.gmra.mxu0 %vm317_vm0, %v315_v34 }
  0x77   : > { %607 = vmatmul.msk.f32.gmra.mxu1 %vm317_vm0, %v315_v34 }
  0x7b   : > { %612 = vmatmul.msk.f32.gmra.mxu2 %vm317_vm0, %v316_v35  ;;  %616 = vmatmul.msk.f32.gmra.mxu3 %vm317_vm0, %v316_v35 }
  0x7d   : > { %604 = vmatmul.msk.f32.gmra.mxu0 %vm317_vm0, %v316_v35 }
  0x7f   : > { %608 = vmatmul.msk.f32.gmra.mxu1 %vm317_vm0, %v316_v35 }
  0xe2   : > { %v347_v36 = vpop.f32.mrf.mxu0 }
  0xe3   : > { %446 = vst [vmem:[%s1088_s22] sm:$0xff] %v347_v36 }
  0xe4   : > { %v376_v37 = vpop.f32.mrf.mxu1 }
  0xe5   : > { %447 = vst [vmem:[%s1088_s22 + $0x8] sm:$0xff] %v376_v37 }
  0xe6   : > { %v405_v38 = vpop.f32.mrf.mxu2  ;;  %v434_v39 = vpop.f32.mrf.mxu3 }
  0xe7   : > { %448 = vst [vmem:[%s1088_s22 + $0x10] sm:$0xff] %v405_v38 }
  0xe8   : > { %449 = vst [vmem:[%s1088_s22 + $0x18] sm:$0xff] %v434_v39 }
  0xea   : > { %v350_v40 = vpop.f32.mrf.mxu0 }
  0xeb   : > { %450 = vst [vmem:[%s1088_s22 + $0x20] sm:$0xff] %v350_v40 }
  0xec   : > { %v379_v41 = vpop.f32.mrf.mxu1 }
  0xed   : > { %451 = vst [vmem:[%s1088_s22 + $0x28] sm:$0xff] %v379_v41 }
  0xee   : > { %v408_v42 = vpop.f32.mrf.mxu2  ;;  %v437_v43 = vpop.f32.mrf.mxu3 }
  0xef   : > { %452 = vst [vmem:[%s1088_s22 + $0x30] sm:$0xff] %v408_v42 }
  0xf0   : > { %453 = vst [vmem:[%s1088_s22 + $0x38] sm:$0xff] %v437_v43 }
  0xf2   : > { %v353_v44 = vpop.f32.mrf.mxu0 }
  0xf3   : > { %454 = vst [vmem:[%s1088_s22 + $0x40] sm:$0xff] %v353_v44 }
  0xf4   : > { %v382_v45 = vpop.f32.mrf.mxu1 }
  0xf5   : > { %455 = vst [vmem:[%s1088_s22 + $0x48] sm:$0xff] %v382_v45 }
  0xf6   : > { %v411_v46 = vpop.f32.mrf.mxu2  ;;  %v440_v47 = vpop.f32.mrf.mxu3 }
  0xf7   : > { %456 = vst [vmem:[%s1088_s22 + $0x50] sm:$0xff] %v411_v46 }
  0xf8   : > { %457 = vst [vmem:[%s1088_s22 + $0x58] sm:$0xff] %v440_v47 }
  0xfa   : > { %v356_v48 = vpop.f32.mrf.mxu0 }
  0xfb   : > { %458 = vst [vmem:[%s1088_s22 + $0x60] sm:$0xff] %v356_v48 }
  0xfc   : > { %v385_v49 = vpop.f32.mrf.mxu1  ;;  %469 = sbr.rel (!%p954_p9) target bundleno = 289 (0x121), region = 40 }
  0xfd   : > { %459 = vst [vmem:[%s1088_s22 + $0x68] sm:$0xff] %v385_v49 }
  0xfe   : > { %v414_v50 = vpop.f32.mrf.mxu2  ;;  %v443_v51 = vpop.f32.mrf.mxu3 }
  0xff   : > { %460 = vst [vmem:[%s1088_s22 + $0x70] sm:$0xff] %v414_v50 }
 0x100   : > { %461 = vst [vmem:[%s1088_s22 + $0x78] sm:$0xff] %v443_v51 }
 0x101   : > { %s1204_s4 = smov (!%p472_p5, %s471_s4), 4 }
 0x102   : > { %s619_s5 = sshll.u32 %s1204_s4, 5 }
 0x103   : > { %s475_s7 = ssub.s32 128, %s619_s5 }
 0x104   : > { %s476_s6 = sshll.u32 %s475_s7, 4 }
 0x105   : > { %477 = vsyncadd %s463_s29, %s476_s6  ;;  %p1115_p8 = scmp.ne.s32.totalorder %s619_s5, 0  ;;  %s628_s8 = sshll.u32 %s863_s12, 5 }
 0x106   : > { %s482_s16 = scalar_lea.hbm %s1178_s2, %s628_s8  ;;  %s622_s28 = sshll.u32 %s1204_s4, 3 }
 0x107   : > { %s485_s30 = sshll.u32 %s1088_s22, 4  ;;  %s487_s27 = sshll.u32 %s482_s16, 4  ;;  %s1125_s30 = int_to_ptr.vmem [resolvable:$true] %s485_s30  ;;  %s1127_s27 = int_to_ptr.hbm [resolvable:$true] %s487_s27 }
 0x108   : > { %s630_s3 = sshll.u32 %s1204_s4, 9  ;;  %s774_s17 = sshra.s32 %s1125_s30, 4  ;;  %s775_s17 = int_to_ptr.vmem [resolvable:$true] %s774_s17 }
 0x109   : > { %s776_s15 = sshrl.u32 %s630_s3, 4  ;;  %s879_s12 = smov [#allocation7]  }
 0x10a   : > { %s781_s26 = scalar_lea.vmem %s775_s17, %s776_s15  ;;  %s785_s20 = scalar_lea.vmem %s879_s12, 256 }
 0x10b   : > { %p782_p9 = scmp.ne.s32.totalorder %s775_s17, %s781_s26  ;;  %p787_p6 = scmp.lt.s32.totalorder %s785_s20, %s781_s26 }
 0x10d   : > { %p783_p0 = pnand %p782_p9, %p1115_p8 }
 0x10f   : > { %p784_p3 = pneg %p783_p0 }
 0x111   : > { %p789_p4 = pnand %p787_p6, %p784_p3 }
 0x113   : > { %792 = shalt.err (!%p789_p4)
}
 0x114   : > { %s793_s22 = sshra.s32 %s1127_s27, 4  ;;  %s804_s6 = scalar_lea.hbm %s1178_s2, 800  ;;  %s794_s22 = int_to_ptr.hbm [resolvable:$true] %s793_s22 }
 0x115   : > { %s800_s19 = scalar_lea.hbm %s794_s22, %s776_s15  ;;  %p805_p13 = scmp.lt.s32.totalorder %s794_s22, %s1178_s2 }
 0x116   : > { %p801_p7 = scmp.ne.s32.totalorder %s794_s22, %s800_s19  ;;  %p806_p1 = scmp.lt.s32.totalorder %s804_s6, %s800_s19 }
 0x118   : > { %p802_p10 = pnand %p801_p7, %p1115_p8  ;;  %p807_p2 = por %p806_p1, %p805_p13 }
 0x11a   : > { %p803_p12 = pneg %p802_p10 }
 0x11c   : > { %p808_p5 = pnand %p807_p2, %p803_p12 }
 0x11e   : > { %811 = shalt.err (!%p808_p5)
}
 0x11f   : > { %s880_s21 = smov 512   ;;  %s881_s16 = smov 3200  }
 0x120   : > { %493 = dma.vmem_to_hbm [thread:$0]  (%p1115_p8), %s1125_s30, %s630_s3, %s1127_s27, %s463_s29, %s880_s21, %s881_s16, %s622_s28  }
 0x121 PF: > { %p649_p9 = scmp.ge.s32.totalorder %s871_s14, 2  ;;  %s502_s17 = sand.u32 1, %s851_s9  }
 0x122   : > { %s503_s15 = scalar_lea.sflag [#allocation4], %s502_s17 }
 0x123   : > { %p644_p0 = pnand %p649_p9, %p961_p11 }
 0x125   : > { %p645_p3 = pneg %p644_p0 }
 0x127   : > { %846 = dma.done.wait (%p645_p3), %s503_s15, 2048  }
 0x128   : > { %848 = vsyncadd (%p645_p3), %s503_s15, 4294965248  ;;  %s19_s14 = sadd.s32 1, %s871_s14   ;;  %s1191_s0 = sld [smem:[#allocation11_spill]] }
 0x129   : > { %p16_p6 = scmp.ge.s32.totalorder %s19_s14, 9   ;;  %s1192_s9 = smov %s855_s10 }
 0x12a   : > { %s1193_s10 = smov %s859_s11  ;;  %s1194_s11 = smov %s959_s24 }
 0x12b   : > { %s1195_s12 = smov %s867_s13  ;;  %18 = sbr.rel (!%p16_p6) target bundleno = 9 (0x9), region = 78 }
 0x12e   : > { %s1196_s13 = smov %s1191_s0 }
 0x130   :  { %509 = vsyncpa [#allocation3], 1 }
 0x131   :  { %511 = vsyncpa [#allocation3 + $0x1], 1 }
 0x132   :  { %512 = vsyncpa [#allocation6], 1 }
 0x133   :  { %514 = vsyncpa [#allocation6 + $0x1], 1 }
 0x134   :  { %515 = vsyncpa [#allocation4], 1 }
 0x135   :  { %517 = vsyncpa [#allocation4 + $0x1], 1 }

</bundles_post_ra>
